<compile_context>
chip_gen: v7x
topology: tpu7x:2x2x1
jax: 0.10.0
libtpu: 0.0.40
codegen_flags: <defaults>
</compile_context>

<pallas_src>
import math
import functools

import jax
import jax.numpy as jnp
from jax.experimental import pallas as pl
from jax.experimental.pallas import tpu as pltpu


def _round_up(x, m):
    return ((x + m - 1) // m) * m


def _aam_kernel(x_ref, wT_ref, o_ref, *, s_cos_m, s_sin_m, s_mm, th, scale):
    # x_ref:  (tb, n_out)  pre-normalized features (mxu_dtype)
    # wT_ref: (n_out, tn)  pre-normalized, pre-transposed weight (mxu_dtype)
    # o_ref:  (tb, tn)     logits tile
    # Transpose-free MXU feed, f32 accumulation.
    cosine = jax.lax.dot_general(
        x_ref[...], wT_ref[...],
        dimension_numbers=(((1,), (0,)), ((), ())),
        preferred_element_type=jnp.float32)

    # sqrt goes to the EUP slot; upper clamp of the original clip is redundant.
    sine = jnp.sqrt(jnp.maximum(1.0 - cosine * cosine, 0.0))

    # Scale folded into the constants: (c*cos_m - s_*sin_m)*s and (c - mm)*s.
    phi = cosine * s_cos_m - sine * s_sin_m
    alt = cosine * scale - s_mm
    o_ref[...] = jnp.where(cosine > th, phi, alt).astype(o_ref.dtype)


def aam_softmax_logits(x, weight, aam_margin=0.2, aam_scale=25.0,
                       tb=256, tn=2048, mxu_dtype=jnp.bfloat16,
                       out_dtype=jnp.float32):
    """x: (B, nOut), weight: (nClasses, nOut) -> logits (B, nClasses)."""
    B, n_out = x.shape
    n_classes, n_out_w = weight.shape
    assert n_out == n_out_w

    eps = 1e-12
    cos_m = math.cos(aam_margin)
    sin_m = math.sin(aam_margin)
    th = math.cos(math.pi - aam_margin)
    mm = math.sin(math.pi - aam_margin) * aam_margin
    s = float(aam_scale)

    # --- wrapper-side: normalize once (f32), cast for the MXU, pad ---------
    x32 = x.astype(jnp.float32)
    w32 = weight.astype(jnp.float32)
    x_inv = jax.lax.rsqrt(jnp.maximum(jnp.sum(x32 * x32, -1, keepdims=True),
                                      eps * eps))
    w_inv = jax.lax.rsqrt(jnp.maximum(jnp.sum(w32 * w32, -1, keepdims=True),
                                      eps * eps))
    xn = x32 * x_inv          # == F.normalize(x)
    wn = w32 * w_inv          # == F.normalize(weight)

    # Tile selection: sublane-aligned batch tile, lane-aligned class tile.
    tb = min(tb, _round_up(B, 8))
    tn = min(tn, _round_up(n_classes, 128))

    in_bytes = jnp.dtype(mxu_dtype).itemsize
    out_bytes = jnp.dtype(out_dtype).itemsize

    def vmem_est(tb_, tn_):
        # double-buffered x, W^T tiles + output tile
        return 2 * (tb_ * n_out * in_bytes + n_out * tn_ * in_bytes
                    + tb_ * tn_ * out_bytes)

    VMEM_BUDGET = 40 * 1024 * 1024   # safe on v5e/v6e/v7x
    while vmem_est(tb, tn) > VMEM_BUDGET and tn > 512:
        tn //= 2
    while vmem_est(tb, tn) > VMEM_BUDGET and tb > 16:
        tb = _round_up(tb // 2, 8)

    B_pad = _round_up(B, tb)

    # v7x megacore: if the whole batch is one tile, try to keep >=2 class tiles.
    if B_pad == tb and _round_up(n_classes, tn) // tn < 2:
        tn_half = _round_up((n_classes + 1) // 2, 128)
        if 128 <= tn_half < tn:
            tn = tn_half
    C_pad = _round_up(n_classes, tn)

    x_pad = jnp.pad(xn, ((0, B_pad - B), (0, 0))).astype(mxu_dtype)
    wT_pad = jnp.pad(wn, ((0, C_pad - n_classes), (0, 0))).T.astype(mxu_dtype)

    est = vmem_est(tb, tn)
    vmem_limit = 48 * 1024 * 1024 if est > 12 * 1024 * 1024 else None

    kernel = functools.partial(
        _aam_kernel,
        s_cos_m=s * cos_m, s_sin_m=s * sin_m, s_mm=s * mm, th=th, scale=s)

    # Class-tile OUTER, batch-tile INNER: W^T block index is constant across
    # the inner axis, so the weight is streamed from HBM exactly once.
    grid = (C_pad // tn, B_pad // tb)

    out = pl.pallas_call(
        kernel,
        out_shape=jax.ShapeDtypeStruct((B_pad, C_pad), out_dtype),
        grid_spec=pltpu.PrefetchScalarGridSpec(
            num_scalar_prefetch=0,
            grid=grid,
            in_specs=[
                pl.BlockSpec((tb, n_out), lambda j, i: (i, 0)),   # x batch tile
                pl.BlockSpec((n_out, tn), lambda j, i: (0, j)),   # W^T class tile
            ],
            out_specs=pl.BlockSpec((tb, tn), lambda j, i: (i, j)),
        ),
        compiler_params=pltpu.CompilerParams(
            dimension_semantics=("parallel", "parallel"),
            vmem_limit_bytes=vmem_limit,
        ),
    )(x_pad, wT_pad)

    return out[:B, :n_classes]


def _reference(x, weight, aam_margin=0.2, aam_scale=25.0,
               mxu_dtype=jnp.float32):
    # Pure-JAX reference mirroring the PyTorch forward (easy_margin=False),
    # optionally with the same bf16 MXU feed as the kernel.
    cos_m = math.cos(aam_margin)
    sin_m = math.sin(aam_margin)
    th = math.cos(math.pi - aam_margin)
    mm = math.sin(math.pi - aam_margin) * aam_margin
    xn = x / jnp.maximum(jnp.linalg.norm(x, axis=-1, keepdims=True), 1e-12)
    wn = weight / jnp.maximum(jnp.linalg.norm(weight, axis=-1, keepdims=True), 1e-12)
    cosine = jnp.dot(xn.astype(mxu_dtype), wn.astype(mxu_dtype).T,
                     preferred_element_type=jnp.float32)
    sine = jnp.sqrt(jnp.clip(1.0 - cosine * cosine, 0.0, 1.0))
    phi = cosine * cos_m - sine * sin_m
    phi = jnp.where(cosine - th > 0.0, phi, cosine - mm)
    return phi * aam_scale


if __name__ == "__main__":
    key = jax.random.PRNGKey(0)
    k_x, k_w = jax.random.split(key)

    B, n_out, n_classes = 8, 32, 16  # small shapes: embeddings (B, nOut)

    x = jax.random.normal(k_x, (B, n_out), dtype=jnp.float32)

    # Deterministic Xavier-normal init of the AAM weight (nClasses, nOut),
    # gain=1 -> std = sqrt(2 / (fan_in + fan_out)).
    xavier_std = math.sqrt(2.0 / (n_out + n_classes))
    weight = xavier_std * jax.random.normal(k_w, (n_classes, n_out),
                                            dtype=jnp.float32)

    # Default fast path: bf16 MXU feed, f32 accumulation / epilogue.
    logits_bf16 = jax.block_until_ready(aam_softmax_logits(x, weight))
    assert logits_bf16.shape == (B, n_classes)
    ref_bf16 = _reference(x, weight, mxu_dtype=jnp.bfloat16)
    assert jnp.allclose(logits_bf16, ref_bf16, atol=2e-3, rtol=2e-3), \
        "bf16 path mismatch vs bf16-matmul reference"

    # Full-precision path: matches the PyTorch forward tightly.
    logits_f32 = jax.block_until_ready(
        aam_softmax_logits(x, weight, mxu_dtype=jnp.float32))
    ref_f32 = _reference(x, weight)
    assert jnp.allclose(logits_f32, ref_f32, atol=1e-4, rtol=1e-4), \
        "f32 path mismatch vs reference"

    print("KERNEL_OK")
</pallas_src>

<mosaic_0001>
module attributes {stable_mosaic.version = 11 : i64} {
  func.func @_aam_kernel(%arg0: i32, %arg1: i32, %arg2: memref<8x32xbf16, #tpu.memory_space<vmem>>, %arg3: memref<32x128xbf16, #tpu.memory_space<vmem>>, %arg4: memref<8x128xf32, #tpu.memory_space<vmem>>) attributes {dimension_semantics = [#tpu.dimension_semantics<parallel>, #tpu.dimension_semantics<parallel>], iteration_bounds = array<i64: 1, 1>, scalar_prefetch = 0 : i64, scratch_operands = 0 : i64, tpu.core_type = #tpu.core_type<tc>, window_params = [{transform_indices = @transform_0, window_bounds = array<i64: 8, 32>}, {transform_indices = @transform_1, window_bounds = array<i64: 32, 128>}, {transform_indices = @transform_2, window_bounds = array<i64: 8, 128>}]} {
    %c0 = arith.constant 0 : index
    %c0_0 = arith.constant 0 : index
    %0 = vector.load %arg2[%c0, %c0_0] : memref<8x32xbf16, #tpu.memory_space<vmem>>, vector<8x32xbf16>
    %c0_1 = arith.constant 0 : index
    %c0_2 = arith.constant 0 : index
    %1 = vector.load %arg3[%c0_1, %c0_2] : memref<32x128xbf16, #tpu.memory_space<vmem>>, vector<32x128xbf16>
    %cst = arith.constant dense<0.000000e+00> : vector<8x128xf32>
    %2 = tpu.matmul %0, %1, %cst {dimension_numbers = #tpu.dot_dimension_numbers<[1], [0], [0], [1], [0, 0, 1, 1], [], []>} : vector<8x32xbf16>, vector<32x128xbf16>, vector<8x128xf32> -> vector<8x128xf32>
    %3 = arith.mulf %2, %2 : vector<8x128xf32>
    %cst_3 = arith.constant 1.000000e+00 : f32
    %4 = vector.broadcast %cst_3 : f32 to vector<8x128xf32>
    %5 = arith.subf %4, %3 : vector<8x128xf32>
    %cst_4 = arith.constant 0.000000e+00 : f32
    %6 = vector.broadcast %cst_4 : f32 to vector<8x128xf32>
    %7 = arith.maximumf %5, %6 : vector<8x128xf32>
    %8 = math.sqrt %7 : vector<8x128xf32>
    %cst_5 = arith.constant 24.5016651 : f32
    %9 = vector.broadcast %cst_5 : f32 to vector<8x128xf32>
    %10 = arith.mulf %2, %9 : vector<8x128xf32>
    %cst_6 = arith.constant 4.96673346 : f32
    %11 = vector.broadcast %cst_6 : f32 to vector<8x128xf32>
    %12 = arith.mulf %8, %11 : vector<8x128xf32>
    %13 = arith.subf %10, %12 : vector<8x128xf32>
    %cst_7 = arith.constant 2.500000e+01 : f32
    %14 = vector.broadcast %cst_7 : f32 to vector<8x128xf32>
    %15 = arith.mulf %2, %14 : vector<8x128xf32>
    %cst_8 = arith.constant 0.993346631 : f32
    %16 = vector.broadcast %cst_8 : f32 to vector<8x128xf32>
    %17 = arith.subf %15, %16 : vector<8x128xf32>
    %cst_9 = arith.constant -0.980066597 : f32
    %18 = vector.broadcast %cst_9 : f32 to vector<8x128xf32>
    %19 = arith.cmpf ogt, %2, %18 : vector<8x128xf32>
    %20 = arith.select %19, %13, %17 : vector<8x128xi1>, vector<8x128xf32>
    %c0_10 = arith.constant 0 : index
    %c0_11 = arith.constant 0 : index
    %21 = vector.load %arg4[%c0_10, %c0_11] : memref<8x128xf32, #tpu.memory_space<vmem>>, vector<8x128xf32>
    tpu.vector_store %arg4[%c0_10, %c0_11], %20 {strides = array<i32>} : memref<8x128xf32, #tpu.memory_space<vmem>>, vector<8x128xf32>,
    return
  }
  func.func @transform_0(%arg0: i32, %arg1: i32) -> (i32, i32) {
    %c0_i32 = arith.constant 0 : i32
    %c0_i32_0 = arith.constant 0 : i32
    return %arg1, %c0_i32 : i32, i32
  }
  func.func @transform_1(%arg0: i32, %arg1: i32) -> (i32, i32) {
    %c0_i32 = arith.constant 0 : i32
    %c0_i32_0 = arith.constant 0 : i32
    return %c0_i32, %arg0 : i32, i32
  }
  func.func @transform_2(%arg0: i32, %arg1: i32) -> (i32, i32) {
    %c0_i32 = arith.constant 0 : i32
    return %arg1, %arg0 : i32, i32
  }
}

</mosaic_0001>

<bundles_post_ra>
// kernel: tpu_custom_call.1
= control target key start
LH: loop header
LB: loop body
LE: loop exit
PB: predicated region body
PF: predicated region fallthrough
CT: control target
= control target key end

     0   :  { %7 = vsyncpa [#allocation3], 0  ;;  %s297_s0 = inlined_call_operand.hbm [shape: bf16[8,32], index: 0, kind: input, shape index: {}]   ;;  %s298_s1 = inlined_call_operand.hbm [shape: bf16[32,128], index: 1, kind: input, shape index: {}]   ;;  %s299_s2 = inlined_call_operand.hbm [shape: f32[8,128], index: 2, kind: output, shape index: {}]  }
   0x1   :  { %8 = vsyncpa [#allocation6], 0 }
   0x2   :  { %9 = vsyncpa [#allocation4], 0  ;;  %s232_s9 = smov [#allocation2]   ;;  %s233_s11 = smov [#allocation5]  }
   0x3   :  { %s16_s10 = sshll.u32 %s232_s9, 4  ;;  %s25_s12 = sshll.u32 %s233_s11, 4  ;;  %s17_s10 = int_to_ptr.vmem [resolvable:$true] %s16_s10  ;;  %s254_s12 = int_to_ptr.vmem [resolvable:$true] %s25_s12 }
   0x4   :  { %s160_s15 = scalar_lea.hbm %s297_s0, 64 }
   0x5   :  { %p161_p0 = scmp.ne.s32.totalorder %s297_s0, %s160_s15  ;;  %p164_p1 = scmp.lt.u32.totalorder %s160_s15, %s297_s0 }
   0x7   :  { %p166_p2 = pnand %p164_p1, %p161_p0 }
   0x9   :  { %169 = shalt.err (!%p166_p2)
}
   0xa   :  { %s170_s20 = scalar_lea.vmem %s17_s10, 64  ;;  %p175_p4 = scmp.lt.s32.totalorder %s17_s10, %s17_s10 }
   0xb   :  { %p171_p3 = scmp.ne.s32.totalorder %s17_s10, %s170_s20  ;;  %p176_p5 = scmp.lt.s32.totalorder %s170_s20, %s170_s20 }
   0xd   :  { %p177_p6 = por %p176_p5, %p175_p4 }
   0xf   :  { %p178_p7 = pnand %p177_p6, %p171_p3 }
  0x11   :  { %181 = shalt.err (!%p178_p7)
}
  0x12   :  { %19 = dma.hbm_to_vmem [thread:$0]  %s297_s0, 64, %s17_s10, [#allocation3]  }
  0x13   :  { %s182_s25 = scalar_lea.hbm %s298_s1, 256 }
  0x14   :  { %p183_p8 = scmp.ne.s32.totalorder %s298_s1, %s182_s25  ;;  %p186_p9 = scmp.lt.u32.totalorder %s182_s25, %s298_s1 }
  0x16   :  { %p188_p10 = pnand %p186_p9, %p183_p8 }
  0x18   :  { %191 = shalt.err (!%p188_p10)
}
  0x19   :  { %s192_s30 = scalar_lea.vmem %s254_s12, 256  ;;  %p197_p12 = scmp.lt.s32.totalorder %s254_s12, %s254_s12 }
  0x1a   :  { %p193_p11 = scmp.ne.s32.totalorder %s254_s12, %s192_s30  ;;  %p198_p13 = scmp.lt.s32.totalorder %s192_s30, %s192_s30 }
  0x1c   :  { %p199_p0 = por %p198_p13, %p197_p12 }
  0x1e   :  { %p200_p1 = pnand %p199_p0, %p193_p11 }
  0x20   :  { %203 = shalt.err (!%p200_p1)
}
  0x21   :  { %s234_s0 = smov 64   ;;  %s235_s3 = smov 4  }
  0x22   :  { %31 = dma.hbm_to_vmem [thread:$0]  %s298_s1, 256, %s254_s12, [#allocation6], %s234_s0, %s234_s0, %s235_s3  }
  0x23   :  { %226 = dma.done.wait [#allocation3], 64  }
  0x24   :  { %227 = vsyncadd [#allocation3], 4294967232 }
  0x25   :  { %228 = dma.done.wait [#allocation6], 256  }
  0x26   :  { %229 = vsyncadd [#allocation6], 4294967040  ;;  %v236_v0 = vmov 0.0   ;;  %vm237_vm0 = vmmov 0   ;;  %v156_v1 = vld [vmem:[#allocation5] sm:$0xff]   ;;  %v157_v2 = vld [vmem:[#allocation5 + $0x8] sm:$0xff]  }
  0x27   :  { %141 = vmatprep.subr.bf16.mxu0 %v236_v0  ;;  %145 = vmatprep.mubr.msk.bf16.mxu0 %vm237_vm0, %v236_v0  ;;  %v39_v3 = vld [vmem:[#allocation2] sm:$0xf]  ;;  %vm56_vm1 = vcmask 261120   ;;  %s238_s1 = smov [#allocation7]  }
  0x28   :  { %142 = vmatpush3.bf16.msra.mxu0 %v156_v1  ;;  %s124_s6 = sshll.u32 %s238_s1, 4  ;;  %s125_s6 = int_to_ptr.vmem [resolvable:$true] %s124_s6 }
  0x29   :  { %143 = vmatprep.subr.bf16.mxu0 %v236_v0  ;;  %s204_s7 = scalar_lea.vmem %s125_s6, 128  ;;  %p209_p3 = scmp.lt.s32.totalorder %s125_s6, %s125_s6 }
  0x2a   :  { %p205_p2 = scmp.ne.s32.totalorder %s125_s6, %s204_s7  ;;  %p210_p4 = scmp.lt.s32.totalorder %s204_s7, %s204_s7 }
  0x2c   :  { %144 = vmatpush3.bf16.msra.mxu0 %v157_v2  ;;  %p211_p5 = por %p210_p4, %p209_p3 }
  0x2e   :  { %p212_p6 = pnand %p211_p5, %p205_p2 }
  0x2f   :  { %146 = vmatmul.mubr.msk.bf16.vlgmr.msra.gmra.mrb[0].mxu0 %vm56_vm1, %v39_v3 }
 0x102   :  { %v94_v4 = vpop.f32.mrb[0].mxu0 }
 0x103   :  { %v100_v5 = vmul.f32 %v94_v4, %v94_v4  ;;  %v147_v6 = vpop.f32.mrb[1].mxu0  ;;  %v113_v14 = vmul.f32 25.0, %v94_v4  ;;  %v110_v17 = vmul.f32 24.501665, %v94_v4  ;;  %vm115_vm4 = vcmp.gt.f32.partialorder %v94_v4, -0.9800666 }
 0x104   :  { %v97_v7 = vpop.f32.mrb[2].mxu0 }
 0x105   :  { %v101_v8 = vsub.f32 1.0, %v100_v5  ;;  %v148_v9 = vpop.f32.mrb[3].mxu0  ;;  %v137_v19 = vadd.f32 -0.99334663, %v113_v14 }
 0x107   :  { %v102_v10 = vmax.f32 %v101_v8, 0.0 }
 0x109   :  { %158 = vrsqrt.f32 %v102_v10  ;;  %vm105_vm2 = vcmp.eq.f32.partialorder %v102_v10, inf  ;;  %v108_v13 = vand.u32 2147483648, %v102_v10  ;;  %vm107_vm3 = vcmp.eq.f32.partialorder %v102_v10, 0.0 }
 0x113   :  { %v159_v11 = vpop.eup %158 }
 0x114   :  { %v104_v12 = vmul.f32 %v159_v11, %v102_v10 }
 0x116   :  { %v106_v15 = vsel %vm105_vm2, %v102_v10, %v104_v12 }
 0x117   :  { %v109_v16 = vsel %vm107_vm3, %v108_v13, %v106_v15 }
 0x118   :  { %v111_v18 = vmul.f32 4.9667335, %v109_v16 }
 0x11a   :  { %v112_v20 = vsub.f32 %v110_v17, %v111_v18 }
 0x11c   :  { %v116_v21 = vsel %vm115_vm4, %v112_v20, %v137_v19 }
 0x11d   :  { %117 = vst [vmem:[#allocation7] sm:$0xff] %v116_v21 }
 0x11e   :  { %215 = shalt.err (!%p212_p6)
}
 0x11f   :  { %s216_s10 = scalar_lea.hbm %s299_s2, 128 }
 0x120   :  { %p217_p7 = scmp.ne.s32.totalorder %s299_s2, %s216_s10  ;;  %p220_p8 = scmp.lt.u32.totalorder %s216_s10, %s299_s2 }
 0x122   :  { %p222_p9 = pnand %p220_p8, %p217_p7 }
 0x124   :  { %225 = shalt.err (!%p222_p9)
}
 0x125   :  { %127 = dma.vmem_to_hbm [thread:$0]  %s125_s6, 128, %s299_s2, [#allocation4]  }
 0x126   :  { %230 = dma.done.wait [#allocation4], 128  }
 0x127   :  { %231 = vsyncadd [#allocation4], 4294967168 }
 0x128   :  { %131 = vsyncpa [#allocation3], 1 }
 0x129   :  { %132 = vsyncpa [#allocation6], 1 }
 0x12a   :  { %133 = vsyncpa [#allocation4], 1 }

</bundles_post_ra>
